<compile_context>
chip_gen: v5e
topology: v5e:2x2
jax: 0.10.0
libtpu: 0.0.40
codegen_flags: <defaults>
</compile_context>

<pallas_src>
import functools

import jax
import jax.numpy as jnp
from jax.experimental import pallas as pl
from jax.experimental.pallas import tpu as pltpu


def _round_up(a, b):
    return (a + b - 1) // b * b


def _vmem_tile_bytes(nb, c, hw, itemsize):
    """VMEM footprint of one (nb, c, hw) tile after (sublane, 128) padding."""
    sub = 8 * max(1, 4 // itemsize)            # 8 for f32, 16 for bf16, 32 for i8
    return nb * _round_up(c, sub) * _round_up(max(hw, 1), 128) * itemsize


def _excite(pooled, w1_t, b1, w2_t, b2):
    """(N, C) f32 pooled mean -> (N, C) f32 sigmoid scale (tiny SE MLP)."""
    h = jnp.dot(pooled, w1_t, preferred_element_type=jnp.float32) + b1
    h = h * jnp.clip(h + 3.0, 0.0, 6.0) * (1.0 / 6.0)            # Hardswish
    s = jnp.dot(h, w2_t, preferred_element_type=jnp.float32) + b2
    return jax.nn.sigmoid(s)


# ---------------------------------------------------------------------------
# Single fused pass: pool + excite + scale, NB images per grid step.
# ---------------------------------------------------------------------------
def _se_fused_kernel(x_ref, w1_ref, b1_ref, w2_ref, b2_ref, o_ref, *, inv_hw):
    # x_ref/o_ref: (NB, C, HW); w1: (C, Cr), b1: (1, Cr), w2: (Cr, C), b2: (1, C)
    x = x_ref[...]
    # Squeeze: global average pool, f32 widening fused into the reduce.
    pooled = jnp.sum(x, axis=2, dtype=jnp.float32) * inv_hw          # (NB, C)
    scale = _excite(pooled, w1_ref[...], b1_ref[...], w2_ref[...], b2_ref[...])
    # Scale at the native dtype; garbage rows of a ragged batch block are
    # masked on store by Pallas.
    o_ref[...] = (x * scale.astype(x.dtype)[:, :, None]).astype(o_ref.dtype)


# ---------------------------------------------------------------------------
# Fallback pass 1: masked pooling, accumulated in a resident (1, C, 1) block.
# ---------------------------------------------------------------------------
def _pool_kernel(x_ref, s_ref, *, hw, thw, need_mask):
    j = pl.program_id(1)

    @pl.when(j == 0)
    def _():
        s_ref[...] = jnp.zeros_like(s_ref)

    x = x_ref[...]                                        # (1, C, THW)
    if need_mask:                                         # static Python branch
        valid = hw - j * thw
        lane = jax.lax.broadcasted_iota(jnp.int32, x.shape, 2)
        x = jnp.where(lane < valid, x, jnp.zeros_like(x))
    s_ref[...] += jnp.sum(x, axis=2, keepdims=True, dtype=jnp.float32)


# ---------------------------------------------------------------------------
# Fallback pass 2: broadcast per-channel scale over an HW tile.
# ---------------------------------------------------------------------------
def _scale_kernel(s_ref, x_ref, o_ref):
    # s_ref: (1, C, 1) in x dtype; x_ref/o_ref: (1, C, THW).
    o_ref[...] = (x_ref[...] * s_ref[...]).astype(o_ref.dtype)


@functools.partial(jax.jit, static_argnames=("max_vmem_bytes",))
def channel_attention(x, w1_t, b1, w2_t, b2, *, max_vmem_bytes=None):
    """x: (N, C, H, W). w1_t: (C, Cr). b1: (1, Cr). w2_t: (Cr, C). b2: (1, C)."""
    N, C, H, W = x.shape
    Cr = w1_t.shape[1]
    HW = H * W
    itemsize = jnp.dtype(x.dtype).itemsize
    inv_hw = 1.0 / HW

    # Per-generation VMEM budget (5/8 of physical): 40 MiB on v7x, 80 MiB on
    # v5e/v6e.  Conservative 64 MiB default if the query is unavailable.
    try:
        vmem_cap = int(pltpu.get_tpu_info().vmem_capacity_bytes)
    except Exception:
        vmem_cap = 64 << 20
    vmem_budget = (vmem_cap * 5) // 8
    if max_vmem_bytes is not None:
        vmem_budget = int(max_vmem_bytes)
    hard_cap = (vmem_cap * 5) // 8

    w_bytes = 2 * (_vmem_tile_bytes(1, C, Cr, 4) + _vmem_tile_bytes(1, 1, Cr, 4)
                   + _vmem_tile_bytes(1, Cr, C, 4) + _vmem_tile_bytes(1, 1, C, 4))
    slack = 2 << 20
    usable = vmem_budget - w_bytes - slack
    per_image = _vmem_tile_bytes(1, C, HW, itemsize)
    target_block = max(vmem_budget // 5, 1 << 20)     # ~8 MiB v7x, ~16 MiB v6e/v5e

    x_flat = x.reshape(N, C, HW)                      # dense; no HBM padding

    if 4 * per_image <= usable:
        # ------------------ single fused pass over batch blocks -------------
        nb = max(1, min(target_block, usable // 4) // per_image)
        if N >= 2:
            nb = min(nb, pl.cdiv(N, 2))               # >=2 steps -> both TCs
        nb = int(min(nb, N))
        grid_n = pl.cdiv(N, nb)                       # ragged tail write-masked

        block_vmem = _vmem_tile_bytes(nb, C, HW, itemsize)
        vmem_limit = int(min(max(4 * block_vmem + w_bytes + slack, 32 << 20),
                             hard_cap))

        out_flat = pl.pallas_call(
            functools.partial(_se_fused_kernel, inv_hw=inv_hw),
            out_shape=jax.ShapeDtypeStruct((N, C, HW), x.dtype),
            grid_spec=pltpu.PrefetchScalarGridSpec(
                num_scalar_prefetch=0,
                grid=(grid_n,),
                in_specs=[
                    pl.BlockSpec((nb, C, HW), lambda n: (n, 0, 0)),
                    pl.BlockSpec((C, Cr), lambda n: (0, 0)),
                    pl.BlockSpec((1, Cr), lambda n: (0, 0)),
                    pl.BlockSpec((Cr, C), lambda n: (0, 0)),
                    pl.BlockSpec((1, C), lambda n: (0, 0)),
                ],
                out_specs=pl.BlockSpec((nb, C, HW), lambda n: (n, 0, 0)),
            ),
            compiler_params=pltpu.CompilerParams(
                dimension_semantics=("parallel",),
                vmem_limit_bytes=vmem_limit,
            ),
        )(x_flat, w1_t, b1, w2_t, b2)
    else:
        # ------------- two-pass fallback: tile HW (large images, v7x) -------
        lane_chunk = _vmem_tile_bytes(1, C, 128, itemsize)
        chunks = max(1, (max(usable, 4 * lane_chunk) // 4) // lane_chunk)
        thw = int(min(128 * chunks, _round_up(HW, 128)))
        n_hw = pl.cdiv(HW, thw)
        need_mask = (HW % thw) != 0

        block_vmem = _vmem_tile_bytes(1, C, thw, itemsize)
        vmem_limit = int(min(max(4 * block_vmem + w_bytes + slack, 32 << 20),
                             hard_cap))

        pooled_sum = pl.pallas_call(
            functools.partial(_pool_kernel, hw=HW, thw=thw, need_mask=need_mask),
            out_shape=jax.ShapeDtypeStruct((N, C, 1), jnp.float32),
            grid_spec=pltpu.PrefetchScalarGridSpec(
                num_scalar_prefetch=0,
                grid=(N, n_hw),
                in_specs=[pl.BlockSpec((1, C, thw), lambda n, j: (n, 0, j))],
                out_specs=pl.BlockSpec((1, C, 1), lambda n, j: (n, 0, 0)),
            ),
            compiler_params=pltpu.CompilerParams(
                dimension_semantics=("parallel", "arbitrary"),
                vmem_limit_bytes=vmem_limit,
            ),
        )(x_flat)

        # Tiny excitation MLP on (N, C): negligible, runs as plain XLA.
        scale = _excite(pooled_sum[:, :, 0] * inv_hw, w1_t, b1, w2_t, b2)
        scale = scale.astype(x.dtype)[:, :, None]                 # (N, C, 1)

        out_flat = pl.pallas_call(
            _scale_kernel,
            out_shape=jax.ShapeDtypeStruct((N, C, HW), x.dtype),
            grid_spec=pltpu.PrefetchScalarGridSpec(
                num_scalar_prefetch=0,
                grid=(N, n_hw),
                in_specs=[
                    pl.BlockSpec((1, C, 1), lambda n, j: (n, 0, 0)),
                    pl.BlockSpec((1, C, thw), lambda n, j: (n, 0, j)),
                ],
                out_specs=pl.BlockSpec((1, C, thw), lambda n, j: (n, 0, j)),
            ),
            compiler_params=pltpu.CompilerParams(
                dimension_semantics=("parallel", "parallel"),
                vmem_limit_bytes=vmem_limit,
            ),
        )(scale, x_flat)

    return out_flat.reshape(N, C, H, W)


def _reference(x, w1_t, b1, w2_t, b2):
    """Pure-JAX reference mirroring the PyTorch forward."""
    pooled = jnp.mean(x.astype(jnp.float32), axis=(2, 3))            # (N, C)
    scale = _excite(pooled, w1_t, b1, w2_t, b2)                      # (N, C)
    return (x.astype(jnp.float32) * scale[:, :, None, None]).astype(x.dtype)


if __name__ == "__main__":
    # reduction_ratio=32 requires in_channels >= 32 -> C=64, hidden Cr = 2.
    reduction_ratio = 32
    N, C, H, W = 2, 64, 16, 16
    Cr = C // reduction_ratio

    key = jax.random.PRNGKey(0)
    kx, kw1, kb1, kw2, kb2, kx2 = jax.random.split(key, 6)

    # Conv2d(C, Cr, 1): kaiming_normal_(mode='fan_out') -> std = sqrt(2/fan_out).
    std1 = (2.0 / Cr) ** 0.5
    w1 = jax.random.normal(kw1, (Cr, C), jnp.float32) * std1
    bound1 = 1.0 / (C ** 0.5)                    # default Conv2d bias init
    b1 = jax.random.uniform(kb1, (1, Cr), jnp.float32, minval=-bound1, maxval=bound1)
    std2 = (2.0 / C) ** 0.5
    w2 = jax.random.normal(kw2, (C, Cr), jnp.float32) * std2
    bound2 = 1.0 / (Cr ** 0.5)
    b2 = jax.random.uniform(kb2, (1, C), jnp.float32, minval=-bound2, maxval=bound2)
    w1_t, w2_t = w1.T, w2.T                      # (C, Cr), (Cr, C)

    ok = True

    # Case 1: aligned spatial size, fused single-pass path.
    x = jax.random.normal(kx, (N, C, H, W), jnp.float32)
    out = jax.block_until_ready(channel_attention(x, w1_t, b1, w2_t, b2))
    ref = _reference(x, w1_t, b1, w2_t, b2)
    assert out.shape == x.shape and out.dtype == x.dtype
    ok = ok and bool(jnp.allclose(out, ref, atol=1e-5, rtol=1e-5))

    # Case 2: ragged batch (N=3) and non-128-multiple spatial size (7x7 = 49).
    x2 = jax.random.normal(kx2, (3, C, 7, 7), jnp.float32)
    out2 = jax.block_until_ready(channel_attention(x2, w1_t, b1, w2_t, b2))
    ref2 = _reference(x2, w1_t, b1, w2_t, b2)
    ok = ok and bool(jnp.allclose(out2, ref2, atol=1e-5, rtol=1e-5))

    # Case 3: force the two-pass (split-HW) fallback with a tiny VMEM budget.
    out3 = jax.block_until_ready(
        channel_attention(x, w1_t, b1, w2_t, b2, max_vmem_bytes=1 << 20))
    ok = ok and bool(jnp.allclose(out3, ref, atol=1e-5, rtol=1e-5))

    assert ok, "mismatch vs reference"
    print("KERNEL_OK")
</pallas_src>

<mosaic_0001>
module attributes {stable_mosaic.version = 11 : i64} {
  func.func @_se_fused_kernel(%arg0: i32, %arg1: memref<1x64x256xf32, #tpu.memory_space<vmem>>, %arg2: memref<64x2xf32, #tpu.memory_space<vmem>>, %arg3: memref<1x2xf32, #tpu.memory_space<vmem>>, %arg4: memref<2x64xf32, #tpu.memory_space<vmem>>, %arg5: memref<1x64xf32, #tpu.memory_space<vmem>>, %arg6: memref<1x64x256xf32, #tpu.memory_space<vmem>>) attributes {dimension_semantics = [#tpu.dimension_semantics<parallel>], iteration_bounds = array<i64: 2>, scalar_prefetch = 0 : i64, scratch_operands = 0 : i64, tpu.core_type = #tpu.core_type<tc>, window_params = [{transform_indices = @transform_0, window_bounds = array<i64: 1, 64, 256>}, {pipeline_mode = #tpu.pipeline_mode<synchronous>, transform_indices = @transform_1, window_bounds = array<i64: 64, 2>}, {pipeline_mode = #tpu.pipeline_mode<synchronous>, transform_indices = @transform_2, window_bounds = array<i64: 1, 2>}, {pipeline_mode = #tpu.pipeline_mode<synchronous>, transform_indices = @transform_3, window_bounds = array<i64: 2, 64>}, {pipeline_mode = #tpu.pipeline_mode<synchronous>, transform_indices = @transform_4, window_bounds = array<i64: 1, 64>}, {transform_indices = @transform_5, window_bounds = array<i64: 1, 64, 256>}]} {
    %c0 = arith.constant 0 : index
    %c0_0 = arith.constant 0 : index
    %c0_1 = arith.constant 0 : index
    %0 = vector.load %arg1[%c0, %c0_0, %c0_1] : memref<1x64x256xf32, #tpu.memory_space<vmem>>, vector<1x64x256xf32>
    %cst = arith.constant dense<0.000000e+00> : vector<1x64xf32>
    %1 = vector.multi_reduction <add>, %0, %cst [2] : vector<1x64x256xf32> to vector<1x64xf32>
    %cst_2 = arith.constant 3.906250e-03 : f32
    %2 = vector.broadcast %cst_2 : f32 to vector<1x64xf32>
    %3 = arith.mulf %1, %2 : vector<1x64xf32>
    %c0_3 = arith.constant 0 : index
    %c0_4 = arith.constant 0 : index
    %4 = vector.load %arg2[%c0_3, %c0_4] : memref<64x2xf32, #tpu.memory_space<vmem>>, vector<64x2xf32>
    %c0_5 = arith.constant 0 : index
    %c0_6 = arith.constant 0 : index
    %5 = vector.load %arg3[%c0_5, %c0_6] : memref<1x2xf32, #tpu.memory_space<vmem>>, vector<1x2xf32>
    %c0_7 = arith.constant 0 : index
    %c0_8 = arith.constant 0 : index
    %6 = vector.load %arg4[%c0_7, %c0_8] : memref<2x64xf32, #tpu.memory_space<vmem>>, vector<2x64xf32>
    %c0_9 = arith.constant 0 : index
    %c0_10 = arith.constant 0 : index
    %7 = vector.load %arg5[%c0_9, %c0_10] : memref<1x64xf32, #tpu.memory_space<vmem>>, vector<1x64xf32>
    %cst_11 = arith.constant dense<0.000000e+00> : vector<1x2xf32>
    %8 = tpu.matmul %3, %4, %cst_11 {dimension_numbers = #tpu.dot_dimension_numbers<[1], [0], [0], [1], [0, 0, 1, 1], [], []>} : vector<1x64xf32>, vector<64x2xf32>, vector<1x2xf32> -> vector<1x2xf32>
    %9 = arith.addf %8, %5 : vector<1x2xf32>
    %cst_12 = arith.constant 3.000000e+00 : f32
    %10 = vector.broadcast %cst_12 : f32 to vector<1x2xf32>
    %11 = arith.addf %9, %10 : vector<1x2xf32>
    %cst_13 = arith.constant 0.000000e+00 : f32
    %cst_14 = arith.constant 6.000000e+00 : f32
    %12 = vector.broadcast %cst_13 : f32 to vector<1x2xf32>
    %13 = arith.maximumf %12, %11 : vector<1x2xf32>
    %14 = vector.broadcast %cst_14 : f32 to vector<1x2xf32>
    %15 = arith.minimumf %14, %13 : vector<1x2xf32>
    %16 = arith.mulf %9, %15 : vector<1x2xf32>
    %cst_15 = arith.constant 0.166666672 : f32
    %17 = vector.broadcast %cst_15 : f32 to vector<1x2xf32>
    %18 = arith.mulf %16, %17 : vector<1x2xf32>
    %cst_16 = arith.constant dense<0.000000e+00> : vector<1x64xf32>
    %19 = tpu.matmul %18, %6, %cst_16 {dimension_numbers = #tpu.dot_dimension_numbers<[1], [0], [0], [1], [0, 0, 1, 1], [], []>} : vector<1x2xf32>, vector<2x64xf32>, vector<1x64xf32> -> vector<1x64xf32>
    %20 = arith.addf %19, %7 : vector<1x64xf32>
    %21 = arith.negf %20 : vector<1x64xf32>
    %22 = math.exp %21 : vector<1x64xf32>
    %cst_17 = arith.constant 1.000000e+00 : f32
    %23 = vector.broadcast %cst_17 : f32 to vector<1x64xf32>
    %24 = arith.addf %23, %22 : vector<1x64xf32>
    %25 = arith.divf %23, %24 : vector<1x64xf32>
    %26 = vector.shape_cast %25 : vector<1x64xf32> to vector<1x64x1xf32>
    %27 = vector.broadcast %26 : vector<1x64x1xf32> to vector<1x64x256xf32>
    %28 = arith.mulf %0, %27 : vector<1x64x256xf32>
    %c0_18 = arith.constant 0 : index
    %c0_19 = arith.constant 0 : index
    %c0_20 = arith.constant 0 : index
    %29 = vector.load %arg6[%c0_18, %c0_19, %c0_20] : memref<1x64x256xf32, #tpu.memory_space<vmem>>, vector<1x64x256xf32>
    tpu.vector_store %arg6[%c0_18, %c0_19, %c0_20], %28 {strides = array<i32>} : memref<1x64x256xf32, #tpu.memory_space<vmem>>, vector<1x64x256xf32>,
    return
  }
  func.func @transform_0(%arg0: i32) -> (i32, i32, i32) {
    %c0_i32 = arith.constant 0 : i32
    %c0_i32_0 = arith.constant 0 : i32
    %c0_i32_1 = arith.constant 0 : i32
    return %arg0, %c0_i32, %c0_i32_0 : i32, i32, i32
  }
  func.func @transform_1(%arg0: i32) -> (i32, i32) {
    %c0_i32 = arith.constant 0 : i32
    %c0_i32_0 = arith.constant 0 : i32
    %c0_i32_1 = arith.constant 0 : i32
    return %c0_i32, %c0_i32_0 : i32, i32
  }
  func.func @transform_2(%arg0: i32) -> (i32, i32) {
    %c0_i32 = arith.constant 0 : i32
    %c0_i32_0 = arith.constant 0 : i32
    %c0_i32_1 = arith.constant 0 : i32
    return %c0_i32, %c0_i32_0 : i32, i32
  }
  func.func @transform_3(%arg0: i32) -> (i32, i32) {
    %c0_i32 = arith.constant 0 : i32
    %c0_i32_0 = arith.constant 0 : i32
    %c0_i32_1 = arith.constant 0 : i32
    return %c0_i32, %c0_i32_0 : i32, i32
  }
  func.func @transform_4(%arg0: i32) -> (i32, i32) {
    %c0_i32 = arith.constant 0 : i32
    %c0_i32_0 = arith.constant 0 : i32
    %c0_i32_1 = arith.constant 0 : i32
    return %c0_i32, %c0_i32_0 : i32, i32
  }
  func.func @transform_5(%arg0: i32) -> (i32, i32, i32) {
    %c0_i32 = arith.constant 0 : i32
    %c0_i32_0 = arith.constant 0 : i32
    %c0_i32_1 = arith.constant 0 : i32
    return %arg0, %c0_i32, %c0_i32_0 : i32, i32, i32
  }
}

</mosaic_0001>

<bundles_post_ra>
// kernel: channel_attention.1
= control target key start
LH: loop header
LB: loop body
LE: loop exit
PB: predicated region body
PF: predicated region fallthrough
CT: control target
= control target key end

     0   :  { %s610_s18 = smov 0   ;;  %s749_s0 = inlined_call_operand.vmem [shape: f32[2,64,256], index: 0, kind: input, shape index: {}]   ;;  %s750_s1 = inlined_call_operand.vmem [shape: f32[64,2], index: 1, kind: input, shape index: {}]   ;;  %s751_s2 = inlined_call_operand.vmem [shape: f32[1,2], index: 2, kind: input, shape index: {}]   ;;  %s752_s3 = inlined_call_operand.vmem [shape: f32[2,64], index: 3, kind: input, shape index: {}]   ;;  %s753_s4 = inlined_call_operand.vmem [shape: f32[1,64], index: 4, kind: input, shape index: {}]   ;;  %s754_s5 = inlined_call_operand.vmem [shape: f32[2,64,256], index: 5, kind: output, shape index: {}]  }
   0x1 LB: > { %s534_s19 = sadd.s32 4294967295, %s578_s18   ;;  %p538_p0 = scmp.ge.s32.totalorder %s578_s18, 1  ;;  %s578_s18 = sphi %s610_s18, %s15_s18  }
   0x2   : > { %p187_p1 = scmp.lt.s32.totalorder %s578_s18, 3 }
   0x4   : > { %p188_p2 = pnand %p538_p0, %p187_p1 }
   0x5   : > { %p215_p3 = scmp.lt.s32.totalorder (!%p188_p2), %s534_s19, 1 }
   0x6   : > { %191 = sbr.rel (%p188_p2) target bundleno = 602 (0x25a), region = 40 }
   0xb   : > { %s756_s19 = smov (!%p215_p3, %s534_s19), 1  ;;  %v280_v24 = vld [vmem:[%s750_s1 + $0x38] sm:$0xff]  ;;  %v279_v25 = vld [vmem:[%s750_s1 + $0x30] sm:$0xff]  ;;  %v278_v26 = vld [vmem:[%s750_s1 + $0x28] sm:$0xff]  ;;  %v292_v32 = vlaneseq  ;;  %vm297_vm0 = vcmask 130112   ;;  %vm301_vm1 = vcmask 195712  }
   0xc   : > { %s549_s20 = sshll.u32 %s756_s19, 7  ;;  %334 = vmatpush.msra.mxu0 %v280_v24  ;;  %v277_v27 = vld [vmem:[%s750_s1 + $0x20] sm:$0xff]  ;;  %v276_v28 = vld [vmem:[%s750_s1 + $0x18] sm:$0xff]  ;;  %v275_v29 = vld [vmem:[%s750_s1 + $0x10] sm:$0xff]  ;;  %vm305_vm2 = vcmask 261312   ;;  %vm309_vm3 = vcmask 326912  }
   0xd   : > { %s219_s23 = scalar_lea.vmem %s749_s0, %s549_s20  ;;  %v274_v30 = vld [vmem:[%s750_s1 + $0x8] sm:$0xff]  ;;  %v273_v31 = vld [vmem:[%s750_s1] sm:$0xff]  ;;  %v293_v36 = vand.u32 127, %v292_v32  ;;  %vm313_vm4 = vcmask 392512   ;;  %vm317_vm5 = vcmask 458112   ;;  %vm321_vm6 = vcmask 523712   ;;  %s712_s26 = scalar_lea.vmem %s754_s5, %s549_s20 }
   0xe   : > { %v626_v0 = vld [vmem:[%s219_s23] sm:$0xff]  ;;  %v628_v1 = vld [vmem:[%s219_s23 + $0x8] sm:$0xff]  ;;  %v644_v9 = vld [vmem:[%s219_s23 + $0x10] sm:$0xff]  ;;  %335 = vmatpush.msra.mxu0 %v279_v25  ;;  %vm323_vm7 = vcmask 523264   ;;  %vm355_vm8 = vcmask 1041408   ;;  %vm351_vm9 = vcmask 15360  }
   0xf   : > { %v630_v2 = vld [vmem:[%s219_s23 + $0x20] sm:$0xff]  ;;  %v241_v3 = vadd.f32 %v628_v1, %v626_v0  ;;  %v634_v4 = vld [vmem:[%s219_s23 + $0x28] sm:$0xff]  ;;  %v646_v10 = vld [vmem:[%s219_s23 + $0x18] sm:$0xff]  ;;  %v295_v38 = vadd.s32 4294967288, %v293_v36  ;;  %v299_v39 = vadd.s32 4294967280, %v293_v36  ;;  %v303_v42 = vadd.s32 4294967272, %v293_v36 }
  0x10   : > { %v636_v5 = vld [vmem:[%s219_s23 + $0x40] sm:$0xff]  ;;  %v638_v6 = vld [vmem:[%s219_s23 + $0x48] sm:$0xff]  ;;  %v247_v7 = vadd.f32 %v634_v4, %v630_v2  ;;  %v648_v11 = vld [vmem:[%s219_s23 + $0x30] sm:$0xff]  ;;  %v244_v15 = vadd.f32 %v646_v10, %v644_v9  ;;  %336 = vmatpush.msra.mxu0 %v278_v26  ;;  %v307_v46 = vadd.s32 4294967264, %v293_v36  ;;  %v311_v53 = vadd.s32 4294967256, %v293_v36 }
  0x11   : > { %v253_v8 = vadd.f32 %v638_v6, %v636_v5  ;;  %242 = vadd.xlane.f32.xlu0 %v241_v3  ;;  %v650_v12 = vld [vmem:[%s219_s23 + $0x38] sm:$0xff]  ;;  %v652_v13 = vld [vmem:[%s219_s23 + $0x50] sm:$0xff]  ;;  %v662_v18 = vld [vmem:[%s219_s23 + $0x60] sm:$0xff]  ;;  %v315_v59 = vadd.s32 4294967248, %v293_v36  ;;  %v319_v62 = vadd.s32 4294967240, %v293_v36 }
  0x12   : > { %248 = vadd.xlane.f32.xlu1 %v247_v7  ;;  %v654_v14 = vld [vmem:[%s219_s23 + $0x58] sm:$0xff]  ;;  %v250_v16 = vadd.f32 %v650_v12, %v648_v11  ;;  %v664_v19 = vld [vmem:[%s219_s23 + $0x68] sm:$0xff]  ;;  %v666_v20 = vld [vmem:[%s219_s23 + $0x70] sm:$0xff]  ;;  %337 = vmatpush.msra.mxu0 %v277_v27 }
  0x13   : > { %254 = vadd.xlane.f32.xlu2 %v253_v8  ;;  %v256_v17 = vadd.f32 %v654_v14, %v652_v13  ;;  %v668_v21 = vld [vmem:[%s219_s23 + $0x78] sm:$0xff]  ;;  %v259_v22 = vadd.f32 %v664_v19, %v662_v18  ;;  %v282_v24 = vld [vmem:[%s752_s3] sm:$0x3] }
  0x14   : > { %v262_v23 = vadd.f32 %v668_v21, %v666_v20  ;;  %338 = vmatpush.msra.mxu0 %v276_v28  ;;  %544 = vmatpush.msk.msra.mxu1 %vm355_vm8, %v282_v24  ;;  %v281_v25 = vld [vmem:[%s751_s2] sm:$0x1] }
  0x16   : > { %339 = vmatpush.msra.mxu0 %v275_v29 }
  0x18   : > { %340 = vmatpush.msra.mxu0 %v274_v30 }
  0x19   : > { %245 = vadd.xlane.f32.xlu0 %v244_v15 }
  0x1a   : > { %251 = vadd.xlane.f32.xlu1 %v250_v16  ;;  %341 = vmatpush.msra.mxu0 %v273_v31 }
  0x1b   : > { %257 = vadd.xlane.f32.xlu2 %v256_v17 }
  0x21   : > { %260 = vadd.xlane.f32.xlu0 %v259_v22 }
  0x22   : > { %263 = vadd.xlane.f32.xlu1 %v262_v23 }
  0x84   : > { %v243_v33 = vpop.xlane.xlu0 %242 }
  0x85   : > { %v249_v34 = vpop.xlane.xlu1 %248  ;;  %v265_v37 = vmul.f32 0.00390625, %v243_v33 }
  0x86   : > { %v255_v35 = vpop.xlane.xlu2 %254  ;;  %v267_v40 = vmul.f32 0.00390625, %v249_v34  ;;  %v400_v34 = vshrl.u32 %v292_v32, 7 }
  0x87   : > { %v294_v48 = vperm.slane %v265_v37, %v293_v36  ;;  %v269_v49 = vmul.f32 0.00390625, %v255_v35  ;;  %v283_v37 = vld [vmem:[%s753_s4] sm:$0x1] }
  0x88   : > { %v300_v51 = vperm.slane %v267_v40, %v299_v39  ;;  %559 = vset.pattern.permute.xlu2 %v400_v34  ;;  %v413_v35 = vadd.s32 16, %v400_v34  ;;  %v407_v36 = vadd.s32 8, %v400_v34 }
  0x89   : > { %v308_v57 = vperm.slane %v269_v49, %v307_v46 }
  0x8a   : > { %561 = vset.pattern.permute.xlu1 %v413_v35  ;;  %560 = vset.pattern.permute.xlu0 %v407_v36 }
  0x8c   : > { %v246_v41 = vpop.xlane.xlu0 %245 }
  0x8d   : > { %v266_v43 = vmul.f32 0.00390625, %v246_v41  ;;  %v252_v44 = vpop.xlane.xlu1 %251 }
  0x8e   : > { %v258_v45 = vpop.xlane.xlu2 %257  ;;  %v268_v47 = vmul.f32 0.00390625, %v252_v44 }
  0x8f   : > { %v296_v50 = vperm.slane %v266_v43, %v295_v38  ;;  %v270_v54 = vmul.f32 0.00390625, %v258_v45 }
  0x90   : > { %v304_v52 = vperm.slane %v268_v47, %v303_v42 }
  0x91   : > { %v298_v55 = vsel %vm297_vm0, %v296_v50, %v294_v48  ;;  %v312_v60 = vperm.slane %v270_v54, %v311_v53  ;;  %v431_v53 = vadd.s32 40, %v400_v34  ;;  %v419_v54 = vadd.s32 24, %v400_v34 }
  0x92   : > { %v302_v56 = vsel %vm301_vm1, %v300_v51, %v298_v55  ;;  %v443_v55 = vadd.s32 56, %v400_v34 }
  0x93   : > { %v306_v58 = vsel %vm305_vm2, %v304_v52, %v302_v56  ;;  %v425_v56 = vadd.s32 32, %v400_v34 }
  0x94   : > { %v261_v61 = vpop.xlane.xlu0 %260  ;;  %v310_v7 = vsel %vm309_vm3, %v308_v57, %v306_v58  ;;  %v437_v57 = vadd.s32 48, %v400_v34 }
  0x95   : > { %v271_v63 = vmul.f32 0.00390625, %v261_v61  ;;  %v264_v3 = vpop.xlane.xlu1 %263  ;;  %v314_v17 = vsel %vm313_vm4, %v312_v60, %v310_v7 }
  0x96   : > { %v272_v8 = vmul.f32 0.00390625, %v264_v3 }
  0x97   : > { %v316_v15 = vperm.slane %v271_v63, %v315_v59 }
  0x98   : > { %v320_v16 = vperm.slane %v272_v8, %v319_v62 }
  0x99   : > { %v318_v22 = vsel %vm317_vm5, %v316_v15, %v314_v17 }
  0x9a   : > { %v322_v23 = vsel %vm321_vm6, %v320_v16, %v318_v22 }
  0x9b   : > { %543 = vmatmul.msk.f32.vlgmr.msra.gmra.mxu0 %vm323_vm7, %v322_v23 }
 0x118   : > { %v343_v26 = vpop.f32.mrf.mxu0 }
 0x119   : > { %v344_v27 = vadd.f32 %v343_v26, %v281_v25 }
 0x11b   : > { %v346_v28 = vadd.f32 3.0, %v344_v27 }
 0x11d   : > { %v347_v29 = vmax.f32 %v346_v28, 0.0 }
 0x11f   : > { %v348_v30 = vmin.f32 %v347_v29, 6.0 }
 0x121   : > { %v349_v31 = vmul.f32 %v348_v30, %v344_v27 }
 0x123   : > { %v350_v33 = vmul.f32 0.16666667, %v349_v31 }
 0x125   : > { %545 = vmatmul.msk.f32.vlgmr.msra.gmra.mxu1 %vm351_vm9, %v350_v33 }
 0x1a2   : > { %v376_v38 = vpop.f32.mrf.mxu1 }
 0x1a3   : > { %v377_v39 = vadd.f32 %v376_v38, %v283_v37 }
 0x1a5   : > { %v546_v40 = vmul.f32 -1.442695, %v377_v39 }
 0x1a7   : > { %568 = vpow2.f32 %v546_v40 }
 0x1ad   : > { %v569_v41 = vpop.eup %568 }
 0x1ae   : > { %v382_v42 = vadd.f32 1.0, %v569_v41 }
 0x1b0   : > { %570 = vrcp.f32 %v382_v42  ;;  %v394_v32 = vand.u32 2147483648, %v382_v42  ;;  %v392_v47 = vand.u32 2147483647, %v382_v42  ;;  %vm388_vm11 = vweird.f32 %v382_v42 }
 0x1b2   : > { %v395_v49 = vor.u32 1.1754944e-38, %v394_v32  ;;  %vm393_vm13 = vcmp.eq.f32.partialorder %v392_v47, 8.507059e+37 }
 0x1b6   : > { %v571_v43 = vpop.eup %570 }
 0x1b7   : > { %v384_v44 = vmul.f32 %v571_v43, %v382_v42  ;;  %vm389_vm10 = vweird.f32 %v571_v43 }
 0x1b8   : > { %vm390_vm12 = vmor %vm388_vm11, %vm389_vm10 }
 0x1b9   : > { %v385_v45 = vsub.f32 1.0, %v384_v44 }
 0x1bb   : > { %v386_v46 = vmul.f32 %v571_v43, %v385_v45 }
 0x1bd   : > { %v387_v48 = vadd.f32 %v571_v43, %v386_v46 }
 0x1bf   : > { %v391_v50 = vsel %vm390_vm12, %v571_v43, %v387_v48 }
 0x1c0   : > { %v396_v51 = vsel %vm393_vm13, %v395_v49, %v391_v50 }
 0x1c1   : > { %v398_v52 = vperm.slane %v396_v51, 0 }
 0x1c3   : > { %415 = vperm.xlu1 %561, %v398_v52   ;;  %409 = vperm.xlu0 %560, %v398_v52  }
 0x1c4   : > { %403 = vperm.xlu2 %559, %v398_v52  }
 0x1cb   : > { %564 = vset.pattern.permute.xlu1 %v431_v53  ;;  %567 = vset.pattern.permute.xlu0 %v443_v55 }
 0x1cc   : > { %562 = vset.pattern.permute.xlu2 %v419_v54 }
 0x1d3   : > { %433 = vperm.xlu1 %564, %v398_v52  }
 0x1d4   : > { %421 = vperm.xlu2 %562, %v398_v52  }
 0x1db   : > { %566 = vset.pattern.permute.xlu1 %v443_v55 }
 0x1dc   : > { %563 = vset.pattern.permute.xlu2 %v425_v56 }
 0x1e3   : > { %445 = vperm.xlu1 %566, %v398_v52  }
 0x1e4   : > { %427 = vperm.xlu2 %563, %v398_v52  }
 0x1ec   : > { %565 = vset.pattern.permute.xlu2 %v437_v57 }
 0x1f4   : > { %439 = vperm.xlu2 %565, %v398_v52  }
 0x21e   : > { %v404_v58 = vpop.permute.xlu2 %403 }
 0x21f   : > { %v447_v59 = vmul.f32 %v404_v58, %v626_v0  ;;  %v448_v60 = vmul.f32 %v404_v58, %v628_v1 }
 0x221   : > { %463 = vst [vmem:[%s712_s26] sm:$0xff] %v447_v59 }
 0x222   : > { %464 = vst [vmem:[%s712_s26 + $0x8] sm:$0xff] %v448_v60 }
 0x22e   : > { %v422_v61 = vpop.permute.xlu2 %421 }
 0x22f   : > { %v453_v62 = vmul.f32 %v422_v61, %v648_v11  ;;  %v454_v63 = vmul.f32 %v422_v61, %v650_v12 }
 0x231   : > { %469 = vst [vmem:[%s712_s26 + $0x30] sm:$0xff] %v453_v62 }
 0x232   : > { %470 = vst [vmem:[%s712_s26 + $0x38] sm:$0xff] %v454_v63 }
 0x235   : > { %v416_v3 = vpop.permute.xlu1 %415  ;;  %v410_v7 = vpop.permute.xlu0 %409 }
 0x236   : > { %v451_v0 = vmul.f32 %v416_v3, %v630_v2  ;;  %v452_v1 = vmul.f32 %v416_v3, %v634_v4  ;;  %v449_v8 = vmul.f32 %v410_v7, %v644_v9  ;;  %v450_v15 = vmul.f32 %v410_v7, %v646_v10 }
 0x238   : > { %467 = vst [vmem:[%s712_s26 + $0x20] sm:$0xff] %v451_v0 }
 0x239   : > { %468 = vst [vmem:[%s712_s26 + $0x28] sm:$0xff] %v452_v1 }
 0x23a   : > { %465 = vst [vmem:[%s712_s26 + $0x10] sm:$0xff] %v449_v8 }
 0x23b   : > { %466 = vst [vmem:[%s712_s26 + $0x18] sm:$0xff] %v450_v15 }
 0x23e   : > { %v428_v11 = vpop.permute.xlu2 %427 }
 0x23f   : > { %v455_v12 = vmul.f32 %v428_v11, %v636_v5  ;;  %v456_v16 = vmul.f32 %v428_v11, %v638_v6 }
 0x241   : > { %471 = vst [vmem:[%s712_s26 + $0x40] sm:$0xff] %v455_v12 }
 0x242   : > { %472 = vst [vmem:[%s712_s26 + $0x48] sm:$0xff] %v456_v16 }
 0x245   : > { %v434_v2 = vpop.permute.xlu1 %433 }
 0x246   : > { %v457_v4 = vmul.f32 %v434_v2, %v652_v13  ;;  %v458_v9 = vmul.f32 %v434_v2, %v654_v14 }
 0x248   : > { %473 = vst [vmem:[%s712_s26 + $0x50] sm:$0xff] %v457_v4 }
 0x249   : > { %474 = vst [vmem:[%s712_s26 + $0x58] sm:$0xff] %v458_v9 }
 0x24e   : > { %v440_v10 = vpop.permute.xlu2 %439 }
 0x24f   : > { %v459_v17 = vmul.f32 %v440_v10, %v662_v18  ;;  %v460_v22 = vmul.f32 %v440_v10, %v664_v19 }
 0x251   : > { %475 = vst [vmem:[%s712_s26 + $0x60] sm:$0xff] %v459_v17 }
 0x252   : > { %476 = vst [vmem:[%s712_s26 + $0x68] sm:$0xff] %v460_v22 }
 0x255   : > { %v446_v5 = vpop.permute.xlu1 %445 }
 0x256   : > { %v461_v6 = vmul.f32 %v446_v5, %v666_v20  ;;  %v462_v23 = vmul.f32 %v446_v5, %v668_v21 }
 0x258   : > { %477 = vst [vmem:[%s712_s26 + $0x70] sm:$0xff] %v461_v6 }
 0x259   : > { %478 = vst [vmem:[%s712_s26 + $0x78] sm:$0xff] %v462_v23 }
 0x25a PF: > { %s15_s18 = sadd.s32 1, %s578_s18  }
 0x25b   : > { %p12_p4 = scmp.ge.s32.totalorder %s15_s18, 4  }
 0x25d   :  { %14 = sbr.rel (!%p12_p4) target bundleno = 1 (0x1), region = 70 }

</bundles_post_ra>
